<compile_context>
chip_gen: v6e
topology: v6e:2x2x1
jax: 0.10.0
libtpu: 0.0.40
codegen_flags: <defaults>
</compile_context>

<pallas_src>
import functools

import jax
import jax.numpy as jnp
from jax.experimental import pallas as pl
from jax.experimental.pallas import tpu as pltpu


def _round_up(x, m):
    return ((x + m - 1) // m) * m


def _attention_v2_kernel(x_ref, ph_ref, wi_ref, bias_ref, wh_ref, ws_ref,
                         out_ref, *, t_valid, use_bf16_elementwise,
                         score_on_mxu):
    BB, Tp = out_ref.shape
    H = wi_ref.shape[1]

    # ---- i2h over all BB*Tp rows: one tall-M MXU matmul (bf16 in, f32 acc).
    # The bf16 cast happens in VMEM; the HBM side stays f32 (single pass).
    x_bf = x_ref[...].astype(jnp.bfloat16)                        # (BB*Tp, I)
    proj_x = jnp.dot(x_bf, wi_ref[...],
                     preferred_element_type=jnp.float32)          # (BB*Tp, H)

    # ---- h2h for all BB rows in one matmul, folded bias (b_i2h + b_h2h).
    ph_bf = ph_ref[...].astype(jnp.bfloat16)                      # (BB, H)
    proj_h = jnp.dot(ph_bf, wh_ref[...],
                     preferred_element_type=jnp.float32) + bias_ref[...]

    # Tp is a multiple of 8 -> this reshape is layout-preserving (no VMEM copy).
    s = proj_x.reshape(BB, Tp, H) + proj_h[:, None, :]            # (BB, Tp, H)

    # ---- tanh + score. bf16 EUP/VPU path on v6e/v7x; f32 on v5e.
    if use_bf16_elementwise:
        t = jnp.tanh(s.astype(jnp.bfloat16))                      # bf16 tanh
    else:
        t = jnp.tanh(s)                                           # f32 tanh (v5e)

    if score_on_mxu:
        # ws_ref is (H, 1): contract on the MXU (idle slot), f32 accumulate.
        e = jnp.dot(t.reshape(BB * Tp, H).astype(jnp.bfloat16), ws_ref[...],
                    preferred_element_type=jnp.float32).reshape(BB, Tp)
    else:
        # ws_ref is (1, H): lane-axis reduce (best for small H), f32 accumulate.
        prod = t * ws_ref[...].astype(t.dtype)
        e = jnp.sum(prod.astype(jnp.float32), axis=-1)            # (BB, Tp)
    # NOTE: the score bias b_s is intentionally dropped — softmax is
    # shift-invariant, so it cannot change alpha.

    # Mask padded T columns (if any) so they receive zero probability.
    if t_valid != Tp:
        col = jax.lax.broadcasted_iota(jnp.int32, (BB, Tp), 1)
        e = jnp.where(col < t_valid, e, jnp.float32(-1e30))

    # ---- softmax over T (lane axis), f32 throughout.
    m = jnp.max(e, axis=-1, keepdims=True)
    p = jnp.exp(e - m)
    denom = jnp.sum(p, axis=-1, keepdims=True)
    alpha = p * pl.reciprocal(denom, approx=True)                 # EUP recip
    out_ref[...] = alpha.astype(out_ref.dtype)


def attention_v2(prev_hidden, batch_H, params, block_b=None):
    """Pallas implementation of AttentionV2.forward.

    prev_hidden: tuple/list; element [0] has shape [B, H]
    batch_H    : [B, T, I]
    returns    : alpha with shape [B, 1, T]
    """
    wi, bi, wh, bh, ws, bs = params   # bs is dead in this forward (softmax shift-invariance)
    del bs
    prev_h = prev_hidden[0]
    B, T, I = batch_H.shape
    H = wi.shape[1]

    # ---- device / VMEM introspection --------------------------------------
    try:
        dev_kind = jax.devices()[0].device_kind.lower()
    except Exception:  # pragma: no cover
        dev_kind = ""
    is_v7 = "v7" in dev_kind
    # v5e (and older) has no bf16 VPU/EUP -> keep the elementwise path in f32.
    use_bf16_elementwise = ("v6" in dev_kind) or is_v7
    try:
        vmem_bytes = int(pltpu.get_tpu_info().vmem_capacity_bytes)
    except Exception:  # pragma: no cover
        vmem_bytes = (64 << 20) if is_v7 else (128 << 20)
    # Buffer budget: leave headroom for compiler scratch / spills; tighter on
    # v7x (64 MiB per TensorCore).
    budget = int(vmem_bytes * (0.40 if is_v7 else 0.45))
    vmem_limit = min(int(vmem_bytes * 0.90), 128 << 20)

    # ---- tiling ------------------------------------------------------------
    T_pad = _round_up(T, 8)            # keeps the in-kernel reshape a pure view
    score_on_mxu = H >= 256            # offload score contraction to MXU if big

    if block_b is None:
        # Per-batch-row VMEM footprint (bytes): double-buffered f32 input
        # block, its in-kernel bf16 copy, the f32 proj/tanh temporaries,
        # prev_hidden block and the output block.
        per_row = (2 * T_pad * I * 4          # f32 batch_H block (x2 buffers)
                   + T_pad * I * 2            # in-kernel bf16 copy
                   + 3 * T_pad * H * 4        # proj_x / s / tanh temporaries
                   + 2 * H * 4                # prev_h block (x2 buffers)
                   + 2 * T_pad * 4)           # output block (x2 buffers)
        fixed = 2 * (I * H + H * H) * 2 + 4 * H * 4 + (64 << 10)
        bb_cap = max(8, ((budget - fixed) // per_row) // 8 * 8)
        # Biggest tile that fits VMEM, never larger than the (padded) batch.
        block_b = min(bb_cap, _round_up(B, 8))
        if is_v7 and B > 8:
            # >= 2 grid steps so the "parallel" axis feeds both TensorCores.
            block_b = min(block_b, _round_up(-(-B // 2), 8))
        block_b = max(block_b, 8)
    block_b = _round_up(block_b, 8)

    n_blocks = -(-B // block_b)
    Bp = n_blocks * block_b

    # ---- padding (harmless extra rows/cols, sliced off afterwards) --------
    pad_b, pad_t = Bp - B, T_pad - T
    if pad_b or pad_t:
        batch_H = jnp.pad(batch_H, ((0, pad_b), (0, pad_t), (0, 0)))
    if pad_b:
        prev_h = jnp.pad(prev_h, ((0, pad_b), (0, 0)))

    # batch_H stays f32 in HBM (bf16 cast happens inside the kernel in VMEM).
    x2d = batch_H.astype(jnp.float32).reshape(Bp * T_pad, I)
    ph = prev_h.astype(jnp.float32)
    wi_b = wi.astype(jnp.bfloat16)
    wh_b = wh.astype(jnp.bfloat16)
    bias_fused = (bi + bh).reshape(1, H).astype(jnp.float32)      # folded bias
    if score_on_mxu:
        ws_k = ws.reshape(H, 1).astype(jnp.bfloat16)
    else:
        ws_k = ws.reshape(1, H).astype(jnp.float32)

    # Constant-index blocks never change across grid steps; single-buffer the
    # large ones (weights) to halve their VMEM footprint (matters on v7x).
    weights_big = (I * H + H * H) * 2 > (2 << 20)

    def _const_spec(shape, big):
        if big:
            try:
                return pl.BlockSpec(shape, lambda b: (0, 0),
                                    pipeline_mode=pl.Buffered(1))
            except TypeError:  # pragma: no cover
                pass
        return pl.BlockSpec(shape, lambda b: (0, 0))

    bbt = block_b * T_pad
    in_specs = [
        pl.BlockSpec((bbt, I), lambda b: (b, 0)),          # batch_H rows (flat, f32)
        pl.BlockSpec((block_b, H), lambda b: (b, 0)),      # prev_hidden[0]
        _const_spec((I, H), weights_big),                  # W_i2h (bf16)
        _const_spec((1, H), False),                        # b_i2h + b_h2h
        _const_spec((H, H), weights_big),                  # W_h2h (bf16)
        _const_spec(ws_k.shape, False),                    # w_score
    ]
    out_spec = pl.BlockSpec((block_b, T_pad), lambda b: (b, 0))

    kernel = functools.partial(
        _attention_v2_kernel,
        t_valid=T,
        use_bf16_elementwise=use_bf16_elementwise,
        score_on_mxu=score_on_mxu,
    )

    out2d = pl.pallas_call(
        kernel,
        out_shape=jax.ShapeDtypeStruct((Bp, T_pad), jnp.float32),
        grid_spec=pltpu.PrefetchScalarGridSpec(
            num_scalar_prefetch=0,
            grid=(n_blocks,),
            in_specs=in_specs,
            out_specs=out_spec,
        ),
        compiler_params=pltpu.CompilerParams(
            dimension_semantics=("parallel",),   # independent batch blocks
            vmem_limit_bytes=vmem_limit,
        ),
    )(x2d, ph, wi_b, bias_fused, wh_b, ws_k)

    out2d = out2d[:B, :T]
    # [B, 1, T] unsqueeze outside the kernel (free metadata reshape).
    return out2d[:, None, :]


def attention_v2_ref(prev_hidden, batch_H, params):
    """Pure-JAX f32 reference mirroring the PyTorch forward."""
    wi, bi, wh, bh, ws, bs = params
    batch_H_proj = batch_H @ wi + bi                            # [B, T, H]
    prev_hidden_proj = (prev_hidden[0] @ wh + bh)[:, None, :]   # [B, 1, H]
    e = jnp.tanh(batch_H_proj + prev_hidden_proj) @ ws + bs     # [B, T, 1]
    e = e[..., 0]                                               # [B, T]
    alpha = jax.nn.softmax(e, axis=1)
    return alpha[:, None, :]                                    # [B, 1, T]


if __name__ == "__main__":
    B, T, I, H = 2, 8, 32, 32

    key = jax.random.PRNGKey(0)
    k = jax.random.split(key, 8)

    # Deterministic synthetic parameters (nn.Linear shapes, stored as [in, out]).
    wi = jax.random.normal(k[0], (I, H), jnp.float32) * 0.1   # i2h weight
    bi = jax.random.normal(k[1], (H,), jnp.float32) * 0.1     # i2h bias
    wh = jax.random.normal(k[2], (H, H), jnp.float32) * 0.1   # h2h weight
    bh = jax.random.normal(k[3], (H,), jnp.float32) * 0.1     # h2h bias
    ws = jax.random.normal(k[4], (H, 1), jnp.float32) * 0.1   # score weight
    bs = jax.random.normal(k[5], (1,), jnp.float32) * 0.1     # score bias
    params = (wi, bi, wh, bh, ws, bs)

    batch_H = jax.random.normal(k[6], (B, T, I), jnp.float32)
    prev_h0 = jax.random.normal(k[7], (B, H), jnp.float32)
    prev_hidden = (prev_h0,)   # mimics the (h, c) tuple; forward only uses [0]

    alpha = attention_v2(prev_hidden, batch_H, params)
    alpha = jax.block_until_ready(alpha)

    alpha_ref = attention_v2_ref(prev_hidden, batch_H, params)

    assert alpha.shape == (B, 1, T), alpha.shape
    # bf16 MXU operands (+ bf16 tanh on v6e/v7x) + approx reciprocal ->
    # loosened tolerance vs. the f32 reference.
    assert jnp.allclose(alpha, alpha_ref, atol=5e-3, rtol=5e-3), (
        jnp.max(jnp.abs(alpha - alpha_ref)))
    assert jnp.allclose(jnp.sum(alpha, axis=-1), 1.0, atol=5e-3)

    print("KERNEL_OK")
</pallas_src>

<mosaic_0001>
module attributes {stable_mosaic.version = 11 : i64} {
  func.func @_attention_v2_kernel(%arg0: i32, %arg1: memref<64x32xf32, #tpu.memory_space<vmem>>, %arg2: memref<8x32xf32, #tpu.memory_space<vmem>>, %arg3: memref<32x32xbf16, #tpu.memory_space<vmem>>, %arg4: memref<1x32xf32, #tpu.memory_space<vmem>>, %arg5: memref<32x32xbf16, #tpu.memory_space<vmem>>, %arg6: memref<1x32xf32, #tpu.memory_space<vmem>>, %arg7: memref<8x8xf32, #tpu.memory_space<vmem>>) attributes {dimension_semantics = [#tpu.dimension_semantics<parallel>], iteration_bounds = array<i64: 1>, scalar_prefetch = 0 : i64, scratch_operands = 0 : i64, tpu.core_type = #tpu.core_type<tc>, window_params = [{transform_indices = @transform_0, window_bounds = array<i64: 64, 32>}, {transform_indices = @transform_1, window_bounds = array<i64: 8, 32>}, {pipeline_mode = #tpu.pipeline_mode<synchronous>, transform_indices = @transform_2, window_bounds = array<i64: 32, 32>}, {pipeline_mode = #tpu.pipeline_mode<synchronous>, transform_indices = @transform_3, window_bounds = array<i64: 1, 32>}, {pipeline_mode = #tpu.pipeline_mode<synchronous>, transform_indices = @transform_4, window_bounds = array<i64: 32, 32>}, {pipeline_mode = #tpu.pipeline_mode<synchronous>, transform_indices = @transform_5, window_bounds = array<i64: 1, 32>}, {transform_indices = @transform_6, window_bounds = array<i64: 8, 8>}]} {
    %c0 = arith.constant 0 : index
    %c0_0 = arith.constant 0 : index
    %0 = vector.load %arg1[%c0, %c0_0] : memref<64x32xf32, #tpu.memory_space<vmem>>, vector<64x32xf32>
    %1 = arith.truncf %0 : vector<64x32xf32> to vector<64x32xbf16>
    %c0_1 = arith.constant 0 : index
    %c0_2 = arith.constant 0 : index
    %2 = vector.load %arg3[%c0_1, %c0_2] : memref<32x32xbf16, #tpu.memory_space<vmem>>, vector<32x32xbf16>
    %cst = arith.constant dense<0.000000e+00> : vector<64x32xf32>
    %3 = tpu.matmul %1, %2, %cst {dimension_numbers = #tpu.dot_dimension_numbers<[1], [0], [0], [1], [0, 0, 1, 1], [], []>} : vector<64x32xbf16>, vector<32x32xbf16>, vector<64x32xf32> -> vector<64x32xf32>
    %c0_3 = arith.constant 0 : index
    %c0_4 = arith.constant 0 : index
    %4 = vector.load %arg2[%c0_3, %c0_4] : memref<8x32xf32, #tpu.memory_space<vmem>>, vector<8x32xf32>
    %5 = arith.truncf %4 : vector<8x32xf32> to vector<8x32xbf16>
    %c0_5 = arith.constant 0 : index
    %c0_6 = arith.constant 0 : index
    %6 = vector.load %arg5[%c0_5, %c0_6] : memref<32x32xbf16, #tpu.memory_space<vmem>>, vector<32x32xbf16>
    %cst_7 = arith.constant dense<0.000000e+00> : vector<8x32xf32>
    %7 = tpu.matmul %5, %6, %cst_7 {dimension_numbers = #tpu.dot_dimension_numbers<[1], [0], [0], [1], [0, 0, 1, 1], [], []>} : vector<8x32xbf16>, vector<32x32xbf16>, vector<8x32xf32> -> vector<8x32xf32>
    %c0_8 = arith.constant 0 : index
    %c0_9 = arith.constant 0 : index
    %8 = vector.load %arg4[%c0_8, %c0_9] : memref<1x32xf32, #tpu.memory_space<vmem>>, vector<1x32xf32>
    %9 = vector.broadcast %8 : vector<1x32xf32> to vector<8x32xf32>
    %10 = arith.addf %7, %9 : vector<8x32xf32>
    %11 = vector.shape_cast %3 : vector<64x32xf32> to vector<8x8x32xf32>
    %12 = vector.shape_cast %10 : vector<8x32xf32> to vector<8x1x32xf32>
    %13 = vector.broadcast %12 : vector<8x1x32xf32> to vector<8x8x32xf32>
    %14 = arith.addf %11, %13 : vector<8x8x32xf32>
    %15 = math.tanh %14 : vector<8x8x32xf32>
    %c0_10 = arith.constant 0 : index
    %c0_11 = arith.constant 0 : index
    %16 = vector.load %arg6[%c0_10, %c0_11] : memref<1x32xf32, #tpu.memory_space<vmem>>, vector<1x32xf32>
    %17 = vector.shape_cast %16 : vector<1x32xf32> to vector<1x1x32xf32>
    %18 = vector.broadcast %17 : vector<1x1x32xf32> to vector<8x8x32xf32>
    %19 = arith.mulf %15, %18 : vector<8x8x32xf32>
    %cst_12 = arith.constant dense<0.000000e+00> : vector<8x8xf32>
    %20 = vector.multi_reduction <add>, %19, %cst_12 [2] : vector<8x8x32xf32> to vector<8x8xf32>
    %cst_13 = arith.constant dense<0xFF800000> : vector<8xf32>
    %21 = vector.multi_reduction <maximumf>, %20, %cst_13 [1] : vector<8x8xf32> to vector<8xf32>
    %22 = vector.shape_cast %21 : vector<8xf32> to vector<8x1xf32>
    %23 = vector.broadcast %22 : vector<8x1xf32> to vector<8x8xf32>
    %24 = arith.subf %20, %23 : vector<8x8xf32>
    %25 = math.exp %24 : vector<8x8xf32>
    %cst_14 = arith.constant dense<0.000000e+00> : vector<8xf32>
    %26 = vector.multi_reduction <add>, %25, %cst_14 [1] : vector<8x8xf32> to vector<8xf32>
    %27 = vector.shape_cast %26 : vector<8xf32> to vector<8x1xf32>
    %28 = tpu.reciprocal %27 {approx = true} : vector<8x1xf32> -> vector<8x1xf32>
    %29 = vector.broadcast %28 : vector<8x1xf32> to vector<8x8xf32>
    %30 = arith.mulf %25, %29 : vector<8x8xf32>
    %c0_15 = arith.constant 0 : index
    %c0_16 = arith.constant 0 : index
    %31 = vector.load %arg7[%c0_15, %c0_16] : memref<8x8xf32, #tpu.memory_space<vmem>>, vector<8x8xf32>
    tpu.vector_store %arg7[%c0_15, %c0_16], %30 {strides = array<i32>} : memref<8x8xf32, #tpu.memory_space<vmem>>, vector<8x8xf32>,
    return
  }
  func.func @transform_0(%arg0: i32) -> (i32, i32) {
    %c0_i32 = arith.constant 0 : i32
    %c0_i32_0 = arith.constant 0 : i32
    return %arg0, %c0_i32 : i32, i32
  }
  func.func @transform_1(%arg0: i32) -> (i32, i32) {
    %c0_i32 = arith.constant 0 : i32
    %c0_i32_0 = arith.constant 0 : i32
    return %arg0, %c0_i32 : i32, i32
  }
  func.func @transform_2(%arg0: i32) -> (i32, i32) {
    %c0_i32 = arith.constant 0 : i32
    %c0_i32_0 = arith.constant 0 : i32
    %c0_i32_1 = arith.constant 0 : i32
    return %c0_i32, %c0_i32_0 : i32, i32
  }
  func.func @transform_3(%arg0: i32) -> (i32, i32) {
    %c0_i32 = arith.constant 0 : i32
    %c0_i32_0 = arith.constant 0 : i32
    %c0_i32_1 = arith.constant 0 : i32
    return %c0_i32, %c0_i32_0 : i32, i32
  }
  func.func @transform_4(%arg0: i32) -> (i32, i32) {
    %c0_i32 = arith.constant 0 : i32
    %c0_i32_0 = arith.constant 0 : i32
    %c0_i32_1 = arith.constant 0 : i32
    return %c0_i32, %c0_i32_0 : i32, i32
  }
  func.func @transform_5(%arg0: i32) -> (i32, i32) {
    %c0_i32 = arith.constant 0 : i32
    %c0_i32_0 = arith.constant 0 : i32
    %c0_i32_1 = arith.constant 0 : i32
    return %c0_i32, %c0_i32_0 : i32, i32
  }
  func.func @transform_6(%arg0: i32) -> (i32, i32) {
    %c0_i32 = arith.constant 0 : i32
    %c0_i32_0 = arith.constant 0 : i32
    return %arg0, %c0_i32 : i32, i32
  }
}

</mosaic_0001>

<bundles_post_ra>
// kernel: tpu_custom_call.1
= control target key start
LH: loop header
LB: loop body
LE: loop exit
PB: predicated region body
PF: predicated region fallthrough
CT: control target
= control target key end

     0   :  { %v789_v1 = vmov 0.0   ;;  %vm790_vm0 = vmmov 0   ;;  %vm53_vm1 = vcmask 261120   ;;  %s994_s0 = inlined_call_operand.vmem [shape: f32[64,32], index: 0, kind: input, shape index: {}]   ;;  %s995_s1 = inlined_call_operand.vmem [shape: f32[8,32], index: 1, kind: input, shape index: {}]   ;;  %s996_s2 = inlined_call_operand.vmem [shape: bf16[32,32], index: 2, kind: input, shape index: {}]   ;;  %s997_s3 = inlined_call_operand.vmem [shape: f32[1,32], index: 3, kind: input, shape index: {}]   ;;  %s998_s4 = inlined_call_operand.vmem [shape: bf16[32,32], index: 4, kind: input, shape index: {}]   ;;  %s999_s5 = inlined_call_operand.vmem [shape: f32[1,32], index: 5, kind: input, shape index: {}]   ;;  %s1000_s6 = inlined_call_operand.hbm [shape: f32[8,8], index: 6, kind: output, shape index: {}]  }
   0x1   :  { %v729_v0 = vld [vmem:[%s996_s2 + $0x8] sm:$0xff]   ;;  %714 = vmatprep.subr.bf16.mxu1 %v789_v1  ;;  %v731_v3 = vld [vmem:[%s996_s2] sm:$0xff]   ;;  %718 = vmatprep.mubr.msk.bf16.mxu1 %vm790_vm0, %v789_v1  ;;  %v27_v9 = vld [vmem:[%s994_s0 + $0x10] sm:$0xff] }
   0x2   :  { %v730_v2 = vld [vmem:[%s998_s4 + $0x8] sm:$0xff]   ;;  %702 = vmatprep.subr.bf16.mxu0 %v729_v0  ;;  %v732_v4 = vld [vmem:[%s998_s4] sm:$0xff]   ;;  %v28_v10 = vld [vmem:[%s994_s0 + $0x18] sm:$0xff] }
   0x3   :  { %715 = vmatpush3.bf16.msra.mxu1 %v730_v2  ;;  %703 = vmatpush3.bf16.msra.mxu0 %v729_v0  ;;  %v25_v5 = vld [vmem:[%s994_s0] sm:$0xff]  ;;  %v26_v6 = vld [vmem:[%s994_s0 + $0x8] sm:$0xff]  ;;  %v34_v13 = vpack.c.bf16 %v28_v10, %v27_v9 }
   0x4   :  { %716 = vmatprep.subr.bf16.mxu1 %v789_v1  ;;  %704 = vmatprep.subr.bf16.mxu0 %v731_v3  ;;  %v131_v7 = vld [vmem:[%s995_s1] sm:$0xff]  ;;  %v33_v8 = vpack.c.bf16 %v26_v6, %v25_v5  ;;  %v30_v14 = vld [vmem:[%s994_s0 + $0x28] sm:$0xff] }
   0x5   :  { %v29_v11 = vld [vmem:[%s994_s0 + $0x20] sm:$0xff]  ;;  %v132_v12 = vpack.c.bf16 %v131_v7, %v131_v7 }
   0x6   :  { %v35_v15 = vpack.c.bf16 %v30_v14, %v29_v11 }
   0x7   :  { %717 = vmatpush3.bf16.msra.mxu1 %v732_v4  ;;  %705 = vmatpush3.bf16.msra.mxu0 %v731_v3 }
   0x8   :  { %11 = vsyncpa [#allocation3], 0  ;;  %706 = vmatprep.mubr.msk.bf16.mxu0 %vm53_vm1, %v33_v8  ;;  %v31_v16 = vld [vmem:[%s994_s0 + $0x30] sm:$0xff]  ;;  %v32_v17 = vld [vmem:[%s994_s0 + $0x38] sm:$0xff]  ;;  %v791_v19 = vmov 1966171168   ;;  %v204_v21 = vlaneseq }
   0x9   :  { %v36_v18 = vpack.c.bf16 %v32_v17, %v31_v16  ;;  %v202_v20 = vunpack.c.l.s4 %v791_v19  ;;  %v688_v24 = vld [vmem:[%s997_s3] ss:$0 sm:$0xff]  ;;  %vm386_vm2 = vcmask 1041409   ;;  %vm388_vm3 = vcmask 1042434  }
   0xa   :  { %719 = vmatmul.mubr.msk.bf16.vlgmr.msra.gmra.mxu1 %vm53_vm1, %v132_v12  ;;  %707 = vmatmul.mubr.msk.bf16.vlgmr.msra.gmra.mxu0 %vm53_vm1, %v34_v13  ;;  %v874_v23 = vshrl.u32 %v204_v21, 7  ;;  %v692_v5 = vld [vmem:[%s999_s5] ss:$0 sm:$0xff]  ;;  %vm390_vm4 = vcmask 1043459   ;;  %vm392_vm5 = vcmask 1044484   ;;  %vm394_vm6 = vcmask 1045509  }
   0xb   :  { %710 = vmatprep.mubr.msk.bf16.mxu0 %vm53_vm1, %v35_v15  ;;  %v203_v22 = vunpack.c.0.s8 %v202_v20  ;;  %vm396_vm7 = vcmask 1046534   ;;  %vm398_vm8 = vcmask 1047559   ;;  %vm401_vm9 = vcmask 64512   ;;  %s793_s5 = smov [#allocation2]  }
   0xc   :  { %v881_v33 = vsub.s32 0, %v874_v23  ;;  %s674_s22 = sshll.u32 %s793_s5, 4  ;;  %s675_s22 = int_to_ptr.vmem [resolvable:$true] %s674_s22 }
   0xd   :  { %v206_v25 = vsub.s32 %v203_v22, %v874_v23  ;;  %s767_s23 = scalar_lea.vmem %s675_s22, 128  ;;  %p772_p1 = scmp.lt.s32.totalorder %s675_s22, %s675_s22 }
   0xe   :  { %p768_p0 = scmp.ne.s32.totalorder %s675_s22, %s767_s23  ;;  %p773_p2 = scmp.lt.s32.totalorder %s767_s23, %s767_s23 }
  0x10   :  { %p774_p3 = por %p773_p2, %p772_p1 }
  0x12   :  { %711 = vmatmul.mubr.msk.bf16.gmra.mxu0 %vm53_vm1, %v36_v18  ;;  %p775_p4 = pnand %p774_p3, %p768_p0 }
  0xca   :  { %v193_v26 = vpop.f32.mrf.mxu1  ;;  %v708_v27 = vpop.f32.mrf.mxu0 }
  0xcb   :  { %v194_v28 = vadd.f32 %v688_v24, %v193_v26 }
  0xcc   :  { %v720_v29 = vpop.f32.mrf.mxu1  ;;  %v100_v30 = vpop.f32.mrf.mxu0 }
  0xcd   :  { %v200_v31 = vcombine.high %v194_v28, %v194_v28  ;;  %v207_v32 = vrot.slane %v194_v28, %v206_v25 }
  0xce   :  { %v196_v34 = vpop.f32.mrf.mxu1  ;;  %v709_v35 = vpop.f32.mrf.mxu0 }
  0xcf   :  { %v214_v36 = vrot.slane %v200_v31, %v206_v25  ;;  %v215_v37 = vcombine.high %v207_v32, %v207_v32  ;;  %v223_v38 = vrot.slane %v207_v32, %v206_v25  ;;  %v353_v32 = vand.u32 127, %v204_v21 }
  0xd0   :  { %v721_v39 = vpop.f32.mrf.mxu1  ;;  %v103_v40 = vpop.f32.mrf.mxu0 }
  0xd1   :  { %v216_v41 = vcombine.high %v214_v36, %v214_v36  ;;  %v245_v42 = vcombine.high %v223_v38, %v223_v38  ;;  %v252_v43 = vrot.slane %v223_v38, %v881_v33  ;;  %v237_v44 = vrot.slane %v215_v37, %v206_v25 }
  0xd2   :  { %v712_v45 = vpop.f32.mrf.mxu0  ;;  %v230_v46 = vrot.slane %v214_v36, %v206_v25 }
  0xd3   :  { %v260_v47 = vrot.slane %v245_v42, %v881_v33  ;;  %v289_v48 = vadd.f32 %v252_v43, %v100_v30  ;;  %v247_v49 = vcombine.high %v237_v44, %v237_v44  ;;  %v256_v50 = vrot.slane %v237_v44, %v881_v33 }
  0xd4   :  { %v246_v51 = vcombine.high %v230_v46, %v230_v46  ;;  %v116_v52 = vpop.f32.mrf.mxu0  ;;  %v268_v53 = vrot.slane %v230_v46, %v881_v33  ;;  %v244_v54 = vrot.slane %v216_v41, %v206_v25 }
  0xd5   :  { %v291_v55 = vadd.f32 %v708_v27, %v260_v47  ;;  %733 = vtanh.f32 %v289_v48  ;;  %v264_v56 = vrot.slane %v247_v49, %v881_v33  ;;  %v290_v57 = vadd.f32 %v256_v50, %v103_v40 }
  0xd6   :  { %v276_v58 = vrot.slane %v246_v51, %v881_v33  ;;  %v713_v59 = vpop.f32.mrf.mxu0  ;;  %v248_v60 = vcombine.high %v244_v54, %v244_v54  ;;  %v293_v62 = vadd.f32 %v268_v53, %v116_v52  ;;  %v272_v63 = vrot.slane %v244_v54, %v881_v33 }
  0xd7   :  { %735 = vtanh.f32 %v291_v55  ;;  %v292_v61 = vadd.f32 %v709_v35, %v264_v56  ;;  %v904_v35 = vsub.s32 %v353_v32, %v874_v23 }
  0xd8   :  { %737 = vtanh.f32 %v290_v57  ;;  %v295_v0 = vadd.f32 %v712_v45, %v276_v58  ;;  %v280_v1 = vrot.slane %v248_v60, %v881_v33  ;;  %v119_v2 = vpop.f32.mrf.mxu0  ;;  %v792_v58 = vmov 0  }
  0xd9   :  { %739 = vtanh.f32 %v292_v61  ;;  %v294_v3 = vadd.f32 %v272_v63, %v119_v2  ;;  %728 = vset.pattern.permute.xlu0 %v792_v58  ;;  %727 = vset.pattern.permute.xlu1 %v792_v58  ;;  %v416_v60 = vsub.s32 2, %v874_v23  ;;  %v420_v61 = vsub.s32 3, %v874_v23 }
  0xda   :  { %741 = vtanh.f32 %v293_v62  ;;  %v296_v4 = vadd.f32 %v713_v59, %v280_v1  ;;  %v412_v59 = vsub.s32 1, %v874_v23  ;;  %v424_v2 = vsub.s32 4, %v874_v23 }
  0xdb   :  { %743 = vtanh.f32 %v295_v0 }
  0xdc   :  { %745 = vtanh.f32 %v294_v3 }
  0xdd   :  { %747 = vtanh.f32 %v296_v4 }
  0xe2   :  { %v734_v6 = vpop.eup %733 }
  0xe3   :  { %v312_v7 = vmul.f32 %v734_v6, %v692_v5 }
  0xe4   :  { %v736_v8 = vpop.eup %735 }
  0xe5   :  { %v738_v9 = vpop.eup %737  ;;  %v320_v10 = vsel %vm53_vm1, %v312_v7, 0.0  ;;  %v314_v11 = vmul.f32 %v736_v8, %v692_v5 }
  0xe6   :  { %v740_v12 = vpop.eup %739  ;;  %321 = vadd.xlane.f32.xlu0 %v320_v10  ;;  %v313_v13 = vmul.f32 %v738_v9, %v692_v5  ;;  %v428_v9 = vsub.s32 5, %v874_v23 }
  0xe7   :  { %v326_v14 = vsel %vm53_vm1, %v314_v11, 0.0  ;;  %v315_v15 = vmul.f32 %v740_v12, %v692_v5  ;;  %v742_v16 = vpop.eup %741 }
  0xe8   :  { %327 = vadd.xlane.f32.xlu1 %v326_v14  ;;  %v744_v17 = vpop.eup %743  ;;  %v323_v18 = vsel %vm53_vm1, %v313_v13, 0.0  ;;  %v316_v19 = vmul.f32 %v742_v16, %v692_v5  ;;  %v432_v13 = vsub.s32 6, %v874_v23 }
  0xe9   :  { %v746_v20 = vpop.eup %745  ;;  %v329_v22 = vsel %vm53_vm1, %v315_v15, 0.0  ;;  %v318_v27 = vmul.f32 %v744_v17, %v692_v5  ;;  %v436_v17 = vsub.s32 7, %v874_v23 }
  0xea   :  { %324 = vadd.xlane.f32.xlu0 %v323_v18  ;;  %v317_v24 = vmul.f32 %v746_v20, %v692_v5  ;;  %v748_v25 = vpop.eup %747  ;;  %v332_v26 = vsel %vm53_vm1, %v316_v19, 0.0 }
  0xeb   :  { %v319_v29 = vmul.f32 %v748_v25, %v692_v5  ;;  %v338_v30 = vsel %vm53_vm1, %v318_v27, 0.0 }
  0xec   :  { %330 = vadd.xlane.f32.xlu1 %v329_v22  ;;  %v335_v28 = vsel %vm53_vm1, %v317_v24, 0.0 }
  0xed   :  { %v341_v31 = vsel %vm53_vm1, %v319_v29, 0.0 }
  0xee   :  { %333 = vadd.xlane.f32.xlu0 %v332_v26 }
  0xf0   :  { %336 = vadd.xlane.f32.xlu1 %v335_v28 }
  0xf2   :  { %339 = vadd.xlane.f32.xlu0 %v338_v30 }
  0xf4   :  { %342 = vadd.xlane.f32.xlu1 %v341_v31 }
 0x16f   :  { %v322_v34 = vpop.xlane.xlu0 %321 }
 0x170   :  { %v357_v38 = vrot.slane %v322_v34, %v904_v35 }
 0x171   :  { %v328_v36 = vpop.xlane.xlu1 %327 }
 0x172   :  { %v365_v40 = vrot.slane %v328_v36, %v904_v35 }
 0x173   :  { %v325_v37 = vpop.xlane.xlu0 %324 }
 0x174   :  { %v361_v39 = vrot.slane %v325_v37, %v904_v35 }
 0x175   :  { %v331_v41 = vpop.xlane.xlu1 %330 }
 0x176   :  { %v387_v42 = vsel %vm386_vm2, %v361_v39, %v357_v38  ;;  %v369_v21 = vrot.slane %v331_v41, %v904_v35 }
 0x177   :  { %v389_v43 = vsel %vm388_vm3, %v365_v40, %v387_v42  ;;  %v334_v44 = vpop.xlane.xlu0 %333 }
 0x178   :  { %v391_v45 = vsel %vm390_vm4, %v369_v21, %v389_v43  ;;  %v373_v46 = vrot.slane %v334_v44, %v904_v35 }
 0x179   :  { %v337_v47 = vpop.xlane.xlu1 %336 }
 0x17a   :  { %v393_v48 = vsel %vm392_vm5, %v373_v46, %v391_v45  ;;  %v377_v49 = vrot.slane %v337_v47, %v904_v35 }
 0x17b   :  { %v340_v50 = vpop.xlane.xlu0 %339 }
 0x17c   :  { %v381_v51 = vrot.slane %v340_v50, %v904_v35  ;;  %v395_v52 = vsel %vm394_vm6, %v377_v49, %v393_v48 }
 0x17d   :  { %v343_v53 = vpop.xlane.xlu1 %342 }
 0x17e   :  { %v385_v54 = vrot.slane %v343_v53, %v904_v35  ;;  %v397_v55 = vsel %vm396_vm7, %v381_v51, %v395_v52 }
 0x180   :  { %v399_v56 = vsel %vm398_vm8, %v385_v54, %v397_v55 }
 0x181   :  { %v402_v57 = vsel %vm401_vm9, %v399_v56, -inf }
 0x182   :  { %403 = vmax.xlane.f32.xlu0 %v402_v57 }
 0x20b   :  { %v404_v62 = vpop.xlane.xlu0 %403 }
 0x20c   :  { %v409_v63 = vrot.slane %v404_v62, %v881_v33  ;;  %v413_v0 = vrot.slane %v404_v62, %v412_v59  ;;  %v417_v1 = vrot.slane %v404_v62, %v416_v60  ;;  %v421_v3 = vrot.slane %v404_v62, %v420_v61 }
 0x20d   :  { %v425_v10 = vrot.slane %v404_v62, %v424_v2  ;;  %v429_v14 = vrot.slane %v404_v62, %v428_v9  ;;  %v433_v18 = vrot.slane %v404_v62, %v432_v13  ;;  %v437_v22 = vrot.slane %v404_v62, %v436_v17 }
 0x20e   :  { %v446_v4 = vsub.f32 %v322_v34, %v409_v63  ;;  %v447_v5 = vsub.f32 %v325_v37, %v413_v0  ;;  %v448_v6 = vsub.f32 %v328_v36, %v417_v1  ;;  %v449_v11 = vsub.f32 %v331_v41, %v421_v3 }
 0x20f   :  { %v450_v15 = vsub.f32 %v334_v44, %v425_v10  ;;  %v451_v19 = vsub.f32 %v337_v47, %v429_v14  ;;  %v452_v24 = vsub.f32 %v340_v50, %v433_v18  ;;  %v453_v28 = vsub.f32 %v343_v53, %v437_v22 }
 0x210   :  { %v454_v7 = vmul.f32 1.442695, %v446_v4  ;;  %v456_v8 = vmul.f32 1.442695, %v447_v5  ;;  %v458_v12 = vmul.f32 1.442695, %v448_v6 }
 0x211   :  { %v460_v16 = vmul.f32 1.442695, %v449_v11  ;;  %v462_v20 = vmul.f32 1.442695, %v450_v15  ;;  %v464_v25 = vmul.f32 1.442695, %v451_v19 }
 0x212   :  { %749 = vpow2.f32 %v454_v7  ;;  %v466_v29 = vmul.f32 1.442695, %v452_v24  ;;  %v468_v31 = vmul.f32 1.442695, %v453_v28 }
 0x213   :  { %751 = vpow2.f32 %v456_v8 }
 0x214   :  { %753 = vpow2.f32 %v458_v12 }
 0x215   :  { %755 = vpow2.f32 %v460_v16 }
 0x216   :  { %757 = vpow2.f32 %v462_v20 }
 0x217   :  { %759 = vpow2.f32 %v464_v25 }
 0x218   :  { %761 = vpow2.f32 %v466_v29 }
 0x219   :  { %763 = vpow2.f32 %v468_v31 }
 0x21f   :  { %v750_v26 = vpop.eup %749 }
 0x220   :  { %v752_v27 = vpop.eup %751  ;;  %479 = vperm.xlu1 %727, %v750_v26  }
 0x221   :  { %482 = vperm.xlu0 %728, %v752_v27   ;;  %v754_v30 = vpop.eup %753 }
 0x222   :  { %v756_v32 = vpop.eup %755 }
 0x223   :  { %v758_v34 = vpop.eup %757 }
 0x224   :  { %485 = vperm.xlu1 %727, %v754_v30   ;;  %v760_v36 = vpop.eup %759 }
 0x225   :  { %v762_v37 = vpop.eup %761 }
 0x226   :  { %v764_v38 = vpop.eup %763 }
 0x228   :  { %488 = vperm.xlu1 %727, %v756_v32  }
 0x22c   :  { %491 = vperm.xlu1 %727, %v758_v34  }
 0x230   :  { %494 = vperm.xlu1 %727, %v760_v36  }
 0x234   :  { %497 = vperm.xlu1 %727, %v762_v37  }
 0x238   :  { %500 = vperm.xlu1 %727, %v764_v38  }
 0x29b   :  { %v480_v39 = vpop.permute.xlu1 %479 }
 0x29c   :  { %v483_v21 = vpop.permute.xlu0 %482  ;;  %v505_v45 = vrot.slane %v480_v39, %v904_v35 }
 0x29d   :  { %v509_v44 = vrot.slane %v483_v21, %v904_v35 }
 0x29f   :  { %v486_v40 = vpop.permute.xlu1 %485  ;;  %v534_v50 = vsel %vm386_vm2, %v509_v44, %v505_v45 }
 0x2a0   :  { %v513_v46 = vrot.slane %v486_v40, %v904_v35 }
 0x2a2   :  { %v535_v52 = vsel %vm388_vm3, %v513_v46, %v534_v50 }
 0x2a3   :  { %v489_v41 = vpop.permute.xlu1 %488 }
 0x2a4   :  { %v517_v47 = vrot.slane %v489_v41, %v904_v35 }
 0x2a6   :  { %v536_v54 = vsel %vm390_vm4, %v517_v47, %v535_v52 }
 0x2a7   :  { %v492_v42 = vpop.permute.xlu1 %491 }
 0x2a8   :  { %v521_v48 = vrot.slane %v492_v42, %v904_v35 }
 0x2aa   :  { %v537_v55 = vsel %vm392_vm5, %v521_v48, %v536_v54 }
 0x2ab   :  { %v495_v43 = vpop.permute.xlu1 %494 }
 0x2ac   :  { %v525_v51 = vrot.slane %v495_v43, %v904_v35 }
 0x2ae   :  { %v538_v57 = vsel %vm394_vm6, %v525_v51, %v537_v55 }
 0x2af   :  { %v498_v49 = vpop.permute.xlu1 %497 }
 0x2b0   :  { %v529_v53 = vrot.slane %v498_v49, %v904_v35 }
 0x2b2   :  { %v539_v62 = vsel %vm396_vm7, %v529_v53, %v538_v57 }
 0x2b3   :  { %v501_v56 = vpop.permute.xlu1 %500 }
 0x2b4   :  { %v533_v58 = vrot.slane %v501_v56, %v904_v35 }
 0x2b6   :  { %v540_v63 = vsel %vm398_vm8, %v533_v58, %v539_v62 }
 0x2b7   :  { %v542_v0 = vsel %vm401_vm9, %v540_v63, 0.0 }
 0x2b8   :  { %543 = vadd.xlane.f32.xlu1 %v542_v0 }
 0x341   :  { %v544_v1 = vpop.xlane.xlu1 %543 }
 0x342   :  { %765 = vrcp.f32 %v544_v1 }
 0x34f   :  { %v766_v3 = vpop.eup %765 }
 0x350   :  { %v550_v4 = vrot.slane %v766_v3, %v881_v33  ;;  %v554_v6 = vrot.slane %v766_v3, %v412_v59  ;;  %v558_v8 = vrot.slane %v766_v3, %v416_v60  ;;  %v562_v11 = vrot.slane %v766_v3, %v420_v61 }
 0x351   :  { %v566_v14 = vrot.slane %v766_v3, %v424_v2  ;;  %v570_v59 = vrot.slane %v766_v3, %v428_v9  ;;  %v574_v60 = vrot.slane %v766_v3, %v432_v13  ;;  %v578_v61 = vrot.slane %v766_v3, %v436_v17 }
 0x352   :  { %v587_v5 = vmul.f32 %v750_v26, %v550_v4  ;;  %v588_v7 = vmul.f32 %v752_v27, %v554_v6  ;;  %v589_v10 = vmul.f32 %v754_v30, %v558_v8  ;;  %v590_v12 = vmul.f32 %v756_v32, %v562_v11 }
 0x353   :  { %v591_v33 = vmul.f32 %v758_v34, %v566_v14  ;;  %v592_v15 = vmul.f32 %v760_v36, %v570_v59  ;;  %v593_v16 = vmul.f32 %v762_v37, %v574_v60  ;;  %v594_v18 = vmul.f32 %v764_v38, %v578_v61 }
 0x354   :  { %604 = vperm.xlu0 %728, %v587_v5  }
 0x358   :  { %607 = vperm.xlu0 %728, %v588_v7  }
 0x35c   :  { %610 = vperm.xlu0 %728, %v589_v10  }
 0x360   :  { %613 = vperm.xlu0 %728, %v590_v12  }
 0x364   :  { %616 = vperm.xlu0 %728, %v591_v33  }
 0x368   :  { %619 = vperm.xlu0 %728, %v592_v15  }
 0x36c   :  { %622 = vperm.xlu0 %728, %v593_v16  }
 0x370   :  { %625 = vperm.xlu0 %728, %v594_v18  }
 0x3cf   :  { %v605_v19 = vpop.permute.xlu0 %604 }
 0x3d0   :  { %v630_v13 = vrot.slane %v605_v19, %v904_v35 }
 0x3d3   :  { %v608_v2 = vpop.permute.xlu0 %607 }
 0x3d4   :  { %v634_v9 = vrot.slane %v608_v2, %v904_v35 }
 0x3d6   :  { %v659_v28 = vsel %vm386_vm2, %v634_v9, %v630_v13 }
 0x3d7   :  { %v611_v20 = vpop.permute.xlu0 %610 }
 0x3d8   :  { %v638_v26 = vrot.slane %v611_v20, %v904_v35 }
 0x3da   :  { %v660_v30 = vsel %vm388_vm3, %v638_v26, %v659_v28 }
 0x3db   :  { %v614_v22 = vpop.permute.xlu0 %613 }
 0x3dc   :  { %v642_v27 = vrot.slane %v614_v22, %v904_v35 }
 0x3de   :  { %v661_v32 = vsel %vm390_vm4, %v642_v27, %v660_v30 }
 0x3df   :  { %v617_v24 = vpop.permute.xlu0 %616 }
 0x3e0   :  { %v646_v23 = vrot.slane %v617_v24, %v904_v35 }
 0x3e2   :  { %v662_v34 = vsel %vm392_vm5, %v646_v23, %v661_v32 }
 0x3e3   :  { %v620_v25 = vpop.permute.xlu0 %619 }
 0x3e4   :  { %v650_v29 = vrot.slane %v620_v25, %v904_v35 }
 0x3e6   :  { %v663_v37 = vsel %vm394_vm6, %v650_v29, %v662_v34 }
 0x3e7   :  { %v623_v17 = vpop.permute.xlu0 %622 }
 0x3e8   :  { %v654_v31 = vrot.slane %v623_v17, %v904_v35 }
 0x3ea   :  { %v664_v39 = vsel %vm396_vm7, %v654_v31, %v663_v37 }
 0x3eb   :  { %v626_v36 = vpop.permute.xlu0 %625 }
 0x3ec   :  { %v658_v38 = vrot.slane %v626_v36, %v904_v35 }
 0x3ee   :  { %v665_v40 = vsel %vm398_vm8, %v658_v38, %v664_v39 }
 0x3ef   :  { %667 = vst.msk [vmem:[#allocation2] sm:$0xff] %vm401_vm9, %v665_v40 }
 0x3f0   :  { %778 = shalt.err (!%p775_p4)
}
 0x3f1   :  { %677 = dma.vmem_to_hbm [thread:$0]  %s675_s22, 128, %s1000_s6, [#allocation3]  }
 0x3f2   :  { %787 = dma.done.wait [#allocation3], 128  }
 0x3f3   :  { %788 = vsyncadd [#allocation3], 4294967168 }
 0x3f4   :  { %681 = vsyncpa [#allocation3], 1 }

</bundles_post_ra>
